<compile_context>
chip_gen: v5e
topology: v5e:2x2
jax: 0.10.0
libtpu: 0.0.40
codegen_flags: <defaults>
</compile_context>

<pallas_src>
import math

import jax
import jax.numpy as jnp
from jax.experimental import pallas as pl
from jax.experimental.pallas import tpu as pltpu


def _add_pe_kernel(x_ref, pe_ref, o_ref):
    # x_ref: (bb, TILE_R, LANE), pe_ref: (1, TILE_R, LANE) -> broadcast add.
    # Add happens in the promoted dtype (matches PyTorch f32-buffer promotion
    # if pe is kept f32), then cast to the output dtype.
    o_ref[...] = (x_ref[...] + pe_ref[...]).astype(o_ref.dtype)


def make_positional_encoding(d_model: int, max_len: int = 5000,
                             dtype=jnp.float32) -> jnp.ndarray:
    """Deterministic buffer construction, identical to the PyTorch __init__.

    `dtype` lets callers pre-cast the buffer to the model dtype once at
    creation time (instead of per forward call)."""
    position = jnp.arange(0, max_len, dtype=jnp.float32)[:, None]            # (max_len, 1)
    div_term = jnp.exp(
        jnp.arange(0, d_model, 2, dtype=jnp.float32) * (-math.log(10000.0) / d_model)
    )                                                                         # (ceil(d/2),)
    angles = position * div_term                                              # (max_len, ceil(d/2))
    pe = jnp.zeros((max_len, d_model), dtype=jnp.float32)
    pe = pe.at[:, 0::2].set(jnp.sin(angles))
    pe = pe.at[:, 1::2].set(jnp.cos(angles[:, : d_model // 2]))               # odd-d guard
    return pe[None, :, :].astype(dtype)                                       # (1, max_len, d_model)


def _pick_row_tile(rows: int, bytes_per_row: int, itemsize: int,
                   target_tile_bytes: int) -> int:
    """Rows per tile: full extent if it fits the target, else a sublane-aligned
    tile. The even-division search is bounded: never shrink below tile//2 --
    one masked edge block is far cheaper than many more grid steps."""
    max_rows = max(1, target_tile_bytes // max(1, bytes_per_row))
    if rows <= max_rows:
        return rows                       # full second-to-last dim -> always a legal block
    sub = max(8, 32 // itemsize)          # 8 for f32, 16 for bf16, 32 for int8/fp8
    tile = max(sub, (max_rows // sub) * sub)
    lo = max(sub, (tile // 2 // sub) * sub)
    for cand in range(tile, lo - 1, -sub):
        if rows % cand == 0:
            return cand                   # evenly dividing tile, no masked edge
    return tile                           # accept one masked edge block


def positional_encoding_forward(x: jnp.ndarray, pe: jnp.ndarray,
                                *, target_tile_bytes: int = 4 * 1024 * 1024,
                                vmem_limit_bytes: int = 40 * 1024 * 1024) -> jnp.ndarray:
    """x: (B, S, D); pe: (1, max_len, D) with max_len >= S. Returns x + pe[:, :S]."""
    B, S, D = x.shape
    assert pe.ndim == 3 and pe.shape[0] == 1 and pe.shape[2] == D and pe.shape[1] >= S

    out_dtype = jnp.result_type(x.dtype, pe.dtype)
    x_itemsize = jnp.dtype(x.dtype).itemsize
    pe_itemsize = jnp.dtype(pe.dtype).itemsize
    out_itemsize = jnp.dtype(out_dtype).itemsize

    if D % 128 == 0 or (S * D) % 128 != 0:
        # Direct path (covers the common transformer D = 256/512/768/1024...):
        # no reshape and no pe slice -- the pe BlockSpec window only ever
        # fetches the first S rows of the (1, max_len, D) buffer from HBM.
        lane, rows = D, S
        x_v, pe_v = x, pe
    else:
        # Ragged-D fallback (e.g. D < 128): flatten the (S, D) plane into
        # lane-dense 128-wide rows to avoid masked vst.msk partial stores.
        lane, rows = 128, (S * D) // 128
        pe_sliced = pe if pe.shape[1] == S else pe[:, :S, :]
        x_v = x.reshape(B, rows, lane)
        pe_v = pe_sliced.reshape(1, rows, lane)

    sub = max(8, 32 // x_itemsize)
    # Fold the whole batch into one block when at least one sublane-aligned
    # row group fits the tile budget with the batch folded (cuts grid steps
    # by a factor of B -- matters most for small shapes).
    fold_batch = B * lane * x_itemsize * min(rows, sub) <= target_tile_bytes

    if fold_batch:
        tile_r = _pick_row_tile(rows, B * lane * x_itemsize, x_itemsize, target_tile_bytes)
        n_r = pl.cdiv(rows, tile_r)
        grid = (n_r,)
        x_spec = pl.BlockSpec((B, tile_r, lane), lambda r: (0, r, 0))
        pe_spec = pl.BlockSpec((1, tile_r, lane), lambda r: (0, r, 0))
        out_spec = pl.BlockSpec((B, tile_r, lane), lambda r: (0, r, 0))
        dims = ("parallel",)
    else:
        tile_r = _pick_row_tile(rows, lane * x_itemsize, x_itemsize, target_tile_bytes)
        n_r = pl.cdiv(rows, tile_r)
        # Row-tile axis first and "parallel" (megacore shards rows, pe fetched
        # once total); batch innermost and "arbitrary" so the pe block index
        # is unchanged across consecutive b steps and its DMA is skipped.
        grid = (n_r, B)
        x_spec = pl.BlockSpec((1, tile_r, lane), lambda r, b: (b, r, 0))
        pe_spec = pl.BlockSpec((1, tile_r, lane), lambda r, b: (0, r, 0))
        out_spec = pl.BlockSpec((1, tile_r, lane), lambda r, b: (b, r, 0))
        dims = ("parallel", "arbitrary")

    cost = pl.CostEstimate(
        flops=B * rows * lane,
        transcendentals=0,
        bytes_accessed=B * rows * lane * (x_itemsize + out_itemsize)
        + rows * lane * pe_itemsize,
    )

    out_v = pl.pallas_call(
        _add_pe_kernel,
        out_shape=jax.ShapeDtypeStruct((B, rows, lane), out_dtype),
        grid_spec=pltpu.PrefetchScalarGridSpec(
            num_scalar_prefetch=0,
            grid=grid,
            in_specs=[x_spec, pe_spec],
            out_specs=out_spec,
        ),
        compiler_params=pltpu.CompilerParams(
            dimension_semantics=dims,
            vmem_limit_bytes=vmem_limit_bytes,
        ),
        cost_estimate=cost,
    )(x_v, pe_v)

    return out_v if (rows, lane) == (S, D) else out_v.reshape(B, S, D)


if __name__ == "__main__":
    # 1) Small shape consistent with the module's forward: (batch, seq, d_model).
    #    Exercises the ragged-D lane-dense fallback with folded batch.
    B, S, D = 2, 8, 32
    max_len = 64
    key = jax.random.PRNGKey(0)
    x = jax.random.normal(key, (B, S, D), dtype=jnp.float32)
    pe = make_positional_encoding(D, max_len=max_len)

    fwd = jax.jit(positional_encoding_forward)
    out = jax.block_until_ready(fwd(x, pe))

    ref = x + pe[:, :S, :]
    assert out.shape == (B, S, D)
    assert jnp.allclose(out, ref, atol=1e-6, rtol=1e-6)

    # 2) Multi-tile fallback path with folded batch (small tile budget forces
    #    several row tiles and the bounded even-division search).
    B2, S2, D2 = 2, 256, 64
    x2 = jax.random.normal(jax.random.PRNGKey(0), (B2, S2, D2), dtype=jnp.float32)
    pe2 = make_positional_encoding(D2, max_len=512)
    out2 = jax.block_until_ready(
        positional_encoding_forward(x2, pe2, target_tile_bytes=16 * 1024))
    assert jnp.allclose(out2, x2 + pe2[:, :S2, :], atol=1e-6, rtol=1e-6)

    # 3) Direct D % 128 == 0 path: unfolded batch (pe DMA-skip across b),
    #    masked edge row tile (S not a multiple of tile_r), pe window < max_len.
    B3, S3, D3 = 2, 36, 128
    x3 = jax.random.normal(jax.random.PRNGKey(0), (B3, S3, D3), dtype=jnp.float32)
    pe3 = make_positional_encoding(D3, max_len=64)
    out3 = jax.block_until_ready(
        positional_encoding_forward(x3, pe3, target_tile_bytes=4096))
    assert jnp.allclose(out3, x3 + pe3[:, :S3, :], atol=1e-6, rtol=1e-6)

    print("KERNEL_OK")
</pallas_src>

<mosaic_0001>
module attributes {stable_mosaic.version = 11 : i64} {
  func.func @_add_pe_kernel(%arg0: i32, %arg1: memref<2x2x128xf32, #tpu.memory_space<vmem>>, %arg2: memref<1x2x128xf32, #tpu.memory_space<vmem>>, %arg3: memref<2x2x128xf32, #tpu.memory_space<vmem>>) attributes {dimension_semantics = [#tpu.dimension_semantics<parallel>], iteration_bounds = array<i64: 1>, scalar_prefetch = 0 : i64, scratch_operands = 0 : i64, tpu.core_type = #tpu.core_type<tc>, window_params = [{transform_indices = @transform_0, window_bounds = array<i64: 2, 2, 128>}, {transform_indices = @transform_1, window_bounds = array<i64: 1, 2, 128>}, {transform_indices = @transform_2, window_bounds = array<i64: 2, 2, 128>}]} {
    %c0 = arith.constant 0 : index
    %c0_0 = arith.constant 0 : index
    %c0_1 = arith.constant 0 : index
    %0 = vector.load %arg1[%c0, %c0_0, %c0_1] : memref<2x2x128xf32, #tpu.memory_space<vmem>>, vector<2x2x128xf32>
    %c0_2 = arith.constant 0 : index
    %c0_3 = arith.constant 0 : index
    %c0_4 = arith.constant 0 : index
    %1 = vector.load %arg2[%c0_2, %c0_3, %c0_4] : memref<1x2x128xf32, #tpu.memory_space<vmem>>, vector<1x2x128xf32>
    %2 = vector.broadcast %1 : vector<1x2x128xf32> to vector<2x2x128xf32>
    %3 = arith.addf %0, %2 : vector<2x2x128xf32>
    %c0_5 = arith.constant 0 : index
    %c0_6 = arith.constant 0 : index
    %c0_7 = arith.constant 0 : index
    %4 = vector.load %arg3[%c0_5, %c0_6, %c0_7] : memref<2x2x128xf32, #tpu.memory_space<vmem>>, vector<2x2x128xf32>
    tpu.vector_store %arg3[%c0_5, %c0_6, %c0_7], %3 {strides = array<i32>} : memref<2x2x128xf32, #tpu.memory_space<vmem>>, vector<2x2x128xf32>,
    return
  }
  func.func @transform_0(%arg0: i32) -> (i32, i32, i32) {
    %c0_i32 = arith.constant 0 : i32
    %c0_i32_0 = arith.constant 0 : i32
    %c0_i32_1 = arith.constant 0 : i32
    return %c0_i32, %arg0, %c0_i32_0 : i32, i32, i32
  }
  func.func @transform_1(%arg0: i32) -> (i32, i32, i32) {
    %c0_i32 = arith.constant 0 : i32
    %c0_i32_0 = arith.constant 0 : i32
    %c0_i32_1 = arith.constant 0 : i32
    return %c0_i32, %arg0, %c0_i32_0 : i32, i32, i32
  }
  func.func @transform_2(%arg0: i32) -> (i32, i32, i32) {
    %c0_i32 = arith.constant 0 : i32
    %c0_i32_0 = arith.constant 0 : i32
    %c0_i32_1 = arith.constant 0 : i32
    return %c0_i32, %arg0, %c0_i32_0 : i32, i32, i32
  }
}

</mosaic_0001>

<bundles_post_ra>
// kernel: positional_encoding_forward.1
= control target key start
LH: loop header
LB: loop body
LE: loop exit
PB: predicated region body
PF: predicated region fallthrough
CT: control target
= control target key end

     0   :  { %s52_s0 = inlined_call_operand.vmem [shape: f32[2,2,128], index: 0, kind: input, shape index: {}]   ;;  %s53_s1 = inlined_call_operand.vmem [shape: f32[1,2,128], index: 1, kind: input, shape index: {}]   ;;  %s54_s2 = inlined_call_operand.vmem [shape: f32[2,2,128], index: 2, kind: output, shape index: {}]  }
   0x1   :  { %v11_v0 = vld [vmem:[%s52_s0] sm:$0x3]  ;;  %v12_v2 = vld [vmem:[%s52_s0 + $0x2] sm:$0x3] }
   0x2   :  { %v13_v1 = vld [vmem:[%s53_s1] sm:$0x3] }
   0x3   :  { %v14_v3 = vadd.f32 %v13_v1, %v11_v0  ;;  %v15_v4 = vadd.f32 %v13_v1, %v12_v2 }
   0x5   :  { %16 = vst [vmem:[%s54_s2] sm:$0x3] %v14_v3 }
   0x6   :  { %17 = vst [vmem:[%s54_s2 + $0x2] sm:$0x3] %v15_v4 }

</bundles_post_ra>
